<compile_context>
chip_gen: v6e
topology: v6e:2x2x1
jax: 0.10.0
libtpu: 0.0.40
codegen_flags: <defaults>
</compile_context>

<pallas_src>
import functools

import jax
import jax.numpy as jnp
from jax import lax
from jax.experimental import pallas as pl
from jax.experimental.pallas import tpu as pltpu


# ----------------------------------------------------------------------------
# Kernel 1: per-point 3-layer MLP (1x1 convs, BN folded) + global max pooling.
# ----------------------------------------------------------------------------
def _point_mlp_kernel(x_ref, w1_ref, b1_ref, w2_ref, b2_ref, w3_ref, b3_ref,
                      out_ref, acc_ref, *, relu_last, tn, tiles_per_chunk,
                      n_valid, needs_mask):
    """Grid (B, NC, TPC): batch x point-chunk (parallel) x point-tile (reduce)."""
    c = pl.program_id(1)
    t = pl.program_id(2)

    @pl.when(t == 0)
    def _():
        acc_ref[...] = jnp.full(acc_ref.shape, -jnp.inf, acc_ref.dtype)

    x = x_ref[0]        # (TN, Cin)  f32
    w1 = w1_ref[0]      # (Cin, C1)  f32  (per-batch when the TNet transform is folded in)

    # Layer 1 (Cin=3 -> 64): tiny-K matmul straight on the MXU with f32 acc.
    # The MXU is nowhere near the binding slot here, so this is free filler and
    # avoids lane-sparse slicing / cross-lane broadcasts of the (TN, 3) tile.
    h = jnp.dot(x, w1, preferred_element_type=jnp.float32) + b1_ref[...]
    h = jnp.maximum(h, 0.0)                                        # (TN, C1) f32

    # Layers 2/3 on the MXU: bf16 inputs, f32 accumulation.
    h = jnp.dot(h.astype(w2_ref.dtype), w2_ref[...],
                preferred_element_type=jnp.float32) + b2_ref[...]
    h = jnp.maximum(h, 0.0)                                        # (TN, C2) f32
    h = jnp.dot(h.astype(w3_ref.dtype), w3_ref[...],
                preferred_element_type=jnp.float32) + b3_ref[...]  # (TN, C3) f32
    if relu_last:
        h = jnp.maximum(h, 0.0)

    if needs_mask:
        # Rows past the true number of points (wrapper padding, cdiv tail, or
        # phantom tiles of an uneven chunk split) must not win the max.
        start = (c * tiles_per_chunk + t) * tn
        rows = lax.broadcasted_iota(jnp.int32, (tn, 1), 0)
        h = jnp.where(start + rows < n_valid, h, -jnp.inf)

    # Running max over point tiles of this chunk.
    acc_ref[...] = jnp.maximum(acc_ref[...], jnp.max(h, axis=0, keepdims=True))

    @pl.when(t == pl.num_programs(2) - 1)
    def _():
        out_ref[0] = acc_ref[...]


# ----------------------------------------------------------------------------
# Kernel 2: dense 3-layer FC head on the pooled features.
# ----------------------------------------------------------------------------
def _fc_head_kernel(g_ref, w1_ref, b1_ref, w2_ref, b2_ref, w3_ref, b3_ref,
                    out_ref):
    """Combines the NC partial max-pools, then runs fc->ReLU->fc->ReLU->fc as
    batched matmuls (good MXU row utilization vs. a per-batch M=1 epilogue)."""
    g = g_ref[:, 0, :]
    for j in range(1, g_ref.shape[1]):          # NC is 1 or 2 (static)
        g = jnp.maximum(g, g_ref[:, j, :])      # (TB, C3) f32

    t = jnp.dot(g.astype(w1_ref.dtype), w1_ref[...],
                preferred_element_type=jnp.float32) + b1_ref[...]
    t = jnp.maximum(t, 0.0)
    t = jnp.dot(t.astype(w2_ref.dtype), w2_ref[...],
                preferred_element_type=jnp.float32) + b2_ref[...]
    t = jnp.maximum(t, 0.0)
    out_ref[...] = (jnp.dot(t.astype(w3_ref.dtype), w3_ref[...],
                            preferred_element_type=jnp.float32)
                    + b3_ref[...])              # (TB, PAD) f32, lane-dense


# ----------------------------------------------------------------------------
# Pallas wrappers
# ----------------------------------------------------------------------------
def _max_point_tile():
    """Chip-aware upper bound on the point tile.
    v6e/v7x: large tiles to amortize the ~0.35us per-grid-step overhead against
    a fast MXU; v5e and older: the MXU already dominates at <=1024 points per
    tile and larger tiles only raise VMEM/spill pressure."""
    try:
        kind = jax.devices()[0].device_kind.lower()
    except Exception:
        return 1024
    if any(tag in kind for tag in ("v2", "v3", "v4", "v5")):
        return 1024
    return 2048


def _choose_point_tile(n_pad, max_tile):
    """Largest bounded point tile.  Prefers an exact divisor (no tail masking);
    otherwise takes the largest candidate and relies on the in-kernel mask.
    Never falls back to TN == N, so per-step VMEM stays bounded for any N."""
    cands = [t for t in (2048, 1024, 512, 256, 128) if t <= max_tile]
    if n_pad <= cands[0]:
        return n_pad                      # single tile (n_pad is a multiple of 8)
    for t in cands:
        if n_pad % t == 0:
            return t
    return cands[0]


def pointnet_point_features(x, conv_layers, *, relu_last, per_batch_w1):
    """x: (B, N, Cin) f32 -> per-chunk pooled features (B, NC, C3) f32."""
    B, N, Cin = x.shape
    (w1, b1), (w2, b2), (w3, b3) = conv_layers
    C1 = w1.shape[-1]
    C3 = w3.shape[-1]

    if w1.ndim == 2:                      # shared first-layer weight
        w1 = w1[None]                     # (1, Cin, C1)

    # Pad the point axis to a multiple of 8 (sublane alignment); padded rows
    # are masked to -inf before the max inside the kernel.
    n_pad = -(-N // 8) * 8
    if n_pad != N:
        x = jnp.pad(x, ((0, 0), (0, n_pad - N), (0, 0)))

    tn = _choose_point_tile(n_pad, _max_point_tile())
    n_tiles = pl.cdiv(n_pad, tn)
    # Split the point axis into NC chunks with independent partial maxes so a
    # second "parallel" grid axis exists even at B == 1 (keeps both v7x
    # TensorCores busy); single-TC chips just see one extra cheap accumulator.
    nc = 2 if n_tiles >= 2 else 1
    tpc = pl.cdiv(n_tiles, nc)
    needs_mask = (nc * tpc * tn) != N
    last_blk = n_tiles - 1

    if nc * tpc == n_tiles:
        x_map = lambda b, c, t: (b, c * tpc + t, 0)
    else:                                 # clamp phantom tiles of the last chunk
        x_map = lambda b, c, t: (b, jnp.minimum(c * tpc + t, last_blk), 0)
    w1_map = ((lambda b, c, t: (b, 0, 0)) if per_batch_w1
              else (lambda b, c, t: (0, 0, 0)))

    def fixed(arr):
        nd = arr.ndim
        return pl.BlockSpec(arr.shape, lambda b, c, t, _nd=nd: (0,) * _nd)

    kern = functools.partial(_point_mlp_kernel, relu_last=relu_last, tn=tn,
                             tiles_per_chunk=tpc, n_valid=N,
                             needs_mask=needs_mask)
    return pl.pallas_call(
        kern,
        out_shape=jax.ShapeDtypeStruct((B, nc, C3), jnp.float32),
        grid=(B, nc, tpc),
        in_specs=[
            pl.BlockSpec((1, tn, Cin), x_map),
            pl.BlockSpec((1, Cin, C1), w1_map),
            fixed(b1), fixed(w2), fixed(b2), fixed(w3), fixed(b3),
        ],
        out_specs=pl.BlockSpec((1, 1, C3), lambda b, c, t: (b, c, 0)),
        scratch_shapes=[pltpu.VMEM((1, C3), jnp.float32)],
        compiler_params=pltpu.CompilerParams(
            dimension_semantics=("parallel", "parallel", "arbitrary"),
            vmem_limit_bytes=40 * 1024 * 1024),
    )(x, w1, b1, w2, b2, w3, b3)


def pointnet_fc_head(pooled, head_layers):
    """pooled: (B, NC, 1024) partial max-pools -> (B, PAD) lane-padded output."""
    B, NC, C3 = pooled.shape
    (hw1, hb1), (hw2, hb2), (hw3, hb3) = head_layers
    PAD = hw3.shape[-1]

    tb = B if B <= 128 else 128           # one block for typical batch sizes
    grid = (pl.cdiv(B, tb),)

    def fixed(arr):
        nd = arr.ndim
        return pl.BlockSpec(arr.shape, lambda i, _nd=nd: (0,) * _nd)

    return pl.pallas_call(
        _fc_head_kernel,
        out_shape=jax.ShapeDtypeStruct((B, PAD), jnp.float32),
        grid=grid,
        in_specs=[
            pl.BlockSpec((tb, NC, C3), lambda i: (i, 0, 0)),
            fixed(hw1), fixed(hb1), fixed(hw2), fixed(hb2), fixed(hw3), fixed(hb3),
        ],
        out_specs=pl.BlockSpec((tb, PAD), lambda i: (i, 0)),
        compiler_params=pltpu.CompilerParams(
            dimension_semantics=("parallel",)),
    )(pooled, hw1, hb1, hw2, hb2, hw3, hb3)


# ----------------------------------------------------------------------------
# Deterministic parameter construction (synthetic weights, BN folded)
# ----------------------------------------------------------------------------
_BN_EPS = 1e-5


def _init_linear(key, cin, cout):
    kw, kb = jax.random.split(key)
    w = 0.05 * jax.random.normal(kw, (cin, cout), jnp.float32)
    b = 0.05 * jax.random.normal(kb, (cout,), jnp.float32)
    return w, b


def _init_bn(key, c):
    k1, k2, k3, k4 = jax.random.split(key, 4)
    gamma = 1.0 + 0.1 * jax.random.normal(k1, (c,), jnp.float32)
    beta = 0.1 * jax.random.normal(k2, (c,), jnp.float32)
    mean = 0.1 * jax.random.normal(k3, (c,), jnp.float32)
    var = 1.0 + 0.1 * jnp.abs(jax.random.normal(k4, (c,), jnp.float32))
    return gamma, beta, mean, var


def _fold_bn(w, b, bn):
    """Fold eval-mode BatchNorm into the preceding linear/conv layer."""
    gamma, beta, mean, var = bn
    s = gamma / jnp.sqrt(var + _BN_EPS)
    return w * s[None, :], (b - mean) * s + beta


def _as_row(b):
    return b.reshape(1, -1)


def _make_conv3(key, dims):
    """Three 1x1-conv layers, BN folded on each. Layer 0 stays f32 (it carries
    the folded TNet transform); layers 1/2 are bf16 MXU inputs."""
    keys = jax.random.split(key, 6)
    layers = []
    for i in range(3):
        w, b = _init_linear(keys[2 * i], dims[i], dims[i + 1])
        w, b = _fold_bn(w, b, _init_bn(keys[2 * i + 1], dims[i + 1]))
        if i > 0:
            w = w.astype(jnp.bfloat16)
        layers.append((w, _as_row(b)))
    return tuple(layers)


def _make_head3(key, dims, *, extra_last_bias=None, pad_to=128):
    """Three FC layers: BN folded + bf16 on layers 0/1, plain f32 linear on
    layer 2, zero-padded along output lanes to `pad_to` (lane-dense store)."""
    keys = jax.random.split(key, 6)
    layers = []
    for i in range(3):
        w, b = _init_linear(keys[2 * i], dims[i], dims[i + 1])
        if i < 2:
            w, b = _fold_bn(w, b, _init_bn(keys[2 * i + 1], dims[i + 1]))
            w = w.astype(jnp.bfloat16)
        else:
            if extra_last_bias is not None:
                b = b + extra_last_bias
            pad = pad_to - dims[i + 1]
            if pad > 0:
                w = jnp.pad(w, ((0, 0), (0, pad)))
                b = jnp.pad(b, ((0, pad),))
        layers.append((w, _as_row(b)))
    return tuple(layers)


def make_pointnet_params(key, num_class, points_dim=3):
    k1, k2, k3, k4 = jax.random.split(key, 4)
    eye_flat = jnp.eye(points_dim, dtype=jnp.float32).reshape(-1)
    pad_t = max(128, pl.cdiv(points_dim * points_dim, 128) * 128)
    pad_c = max(128, pl.cdiv(num_class, 128) * 128)
    return {
        "num_class": num_class,
        "points_dim": points_dim,
        # TNet(k): conv k->64->128->1024 (BN+ReLU each), fc 1024->512->256->k*k (+I)
        "tnet1_conv": _make_conv3(k1, (points_dim, 64, 128, 1024)),
        "tnet1_fc": _make_head3(k2, (1024, 512, 256, points_dim * points_dim),
                                extra_last_bias=eye_flat, pad_to=pad_t),
        # Trunk convs: 3->64 (BN,ReLU), 64->128 (BN,ReLU), 128->1024 (BN)
        "trunk_conv": _make_conv3(k3, (points_dim, 64, 128, 1024)),
        # Head: fc6 (BN,ReLU), fc7 (Dropout[eval]=id, BN, ReLU), fc8 plain
        "head_fc": _make_head3(k4, (1024, 512, 256, num_class), pad_to=pad_c),
    }


# ----------------------------------------------------------------------------
# Forward pass (two trunk launches + two tiny FC-head launches)
# ----------------------------------------------------------------------------
def pointnet_classification_forward(x, params):
    """x: (B, num_points, points_dim) f32 -> (logits (B, num_class), None)."""
    B = x.shape[0]
    k = params["points_dim"]

    # TNet1: in channel-last layout x is already the (B, N, k) the TNet sees.
    pooled_t = pointnet_point_features(x, params["tnet1_conv"],
                                       relu_last=True, per_batch_w1=False)
    t1 = pointnet_fc_head(pooled_t, params["tnet1_fc"])[:, :k * k]
    t1 = t1.reshape(B, k, k)                                      # (B, k, k)

    # Fold the kxk transform into the trunk's first-layer weights:
    #   relu((x @ t1) @ W1 + b1) == relu(x @ (t1 @ W1) + b1)
    (w1, b1), l2, l3 = params["trunk_conv"]
    w1_b = jnp.einsum("bij,jk->bik", t1, w1)                      # (B, k, 64) f32

    pooled = pointnet_point_features(x, ((w1_b, b1), l2, l3),
                                     relu_last=False, per_batch_w1=True)
    logits = pointnet_fc_head(pooled, params["head_fc"])[:, :params["num_class"]]
    return logits, None   # trans_mtx2 is None (feature_transformation=False)


# ----------------------------------------------------------------------------
if __name__ == "__main__":
    B, N, POINTS_DIM, NUM_CLASS = 2, 16, 3, 10

    key = jax.random.PRNGKey(0)
    k_params, k_x = jax.random.split(key)
    params = make_pointnet_params(k_params, NUM_CLASS, POINTS_DIM)
    x = jax.random.normal(k_x, (B, N, POINTS_DIM), jnp.float32)

    logits, trans2 = pointnet_classification_forward(x, params)
    logits = jax.block_until_ready(logits)

    assert logits.shape == (B, NUM_CLASS)
    assert trans2 is None
    assert bool(jnp.all(jnp.isfinite(logits)))
    print("KERNEL_OK")
</pallas_src>

<mosaic_0001>
module attributes {stable_mosaic.version = 11 : i64} {
  func.func @_point_mlp_kernel(%arg0: i32, %arg1: i32, %arg2: i32, %arg3: memref<1x16x3xf32, #tpu.memory_space<vmem>>, %arg4: memref<1x3x64xf32, #tpu.memory_space<vmem>>, %arg5: memref<1x64xf32, #tpu.memory_space<vmem>>, %arg6: memref<64x128xbf16, #tpu.memory_space<vmem>>, %arg7: memref<1x128xf32, #tpu.memory_space<vmem>>, %arg8: memref<128x1024xbf16, #tpu.memory_space<vmem>>, %arg9: memref<1x1024xf32, #tpu.memory_space<vmem>>, %arg10: memref<1x1x1024xf32, #tpu.memory_space<vmem>>, %arg11: memref<1x1024xf32, #tpu.memory_space<vmem>>) attributes {dimension_semantics = [#tpu.dimension_semantics<parallel>, #tpu.dimension_semantics<parallel>, #tpu.dimension_semantics<arbitrary>], iteration_bounds = array<i64: 2, 1, 1>, scalar_prefetch = 0 : i64, scratch_operands = 1 : i64, tpu.core_type = #tpu.core_type<tc>, window_params = [{transform_indices = @transform_0, window_bounds = array<i64: 1, 16, 3>}, {pipeline_mode = #tpu.pipeline_mode<synchronous>, transform_indices = @transform_1, window_bounds = array<i64: 1, 3, 64>}, {pipeline_mode = #tpu.pipeline_mode<synchronous>, transform_indices = @transform_2, window_bounds = array<i64: 1, 64>}, {pipeline_mode = #tpu.pipeline_mode<synchronous>, transform_indices = @transform_3, window_bounds = array<i64: 64, 128>}, {pipeline_mode = #tpu.pipeline_mode<synchronous>, transform_indices = @transform_4, window_bounds = array<i64: 1, 128>}, {pipeline_mode = #tpu.pipeline_mode<synchronous>, transform_indices = @transform_5, window_bounds = array<i64: 128, 1024>}, {pipeline_mode = #tpu.pipeline_mode<synchronous>, transform_indices = @transform_6, window_bounds = array<i64: 1, 1024>}, {transform_indices = @transform_7, window_bounds = array<i64: 1, 1, 1024>}]} {
    %c0_i32 = arith.constant 0 : i32
    %0 = arith.cmpi eq, %arg2, %c0_i32 : i32
    %1 = arith.extui %0 : i1 to i32
    %c0_i32_0 = arith.constant 0 : i32
    %2 = arith.cmpi ne, %1, %c0_i32_0 : i32
    scf.if %2 {
      %cst_28 = arith.constant 0xFF800000 : f32
      %37 = vector.broadcast %cst_28 : f32 to vector<1x1024xf32>
      %c0_29 = arith.constant 0 : index
      %c0_30 = arith.constant 0 : index
      %38 = vector.load %arg11[%c0_29, %c0_30] : memref<1x1024xf32, #tpu.memory_space<vmem>>, vector<1x1024xf32>
      tpu.vector_store %arg11[%c0_29, %c0_30], %37 {strides = array<i32>} : memref<1x1024xf32, #tpu.memory_space<vmem>>, vector<1x1024xf32>,
    } else {
    }
    %c0 = arith.constant 0 : index
    %c0_1 = arith.constant 0 : index
    %c0_2 = arith.constant 0 : index
    %3 = vector.load %arg3[%c0, %c0_1, %c0_2] : memref<1x16x3xf32, #tpu.memory_space<vmem>>, vector<1x16x3xf32>
    %4 = vector.shape_cast %3 : vector<1x16x3xf32> to vector<16x3xf32>
    %c0_3 = arith.constant 0 : index
    %c0_4 = arith.constant 0 : index
    %c0_5 = arith.constant 0 : index
    %5 = vector.load %arg4[%c0_3, %c0_4, %c0_5] : memref<1x3x64xf32, #tpu.memory_space<vmem>>, vector<1x3x64xf32>
    %6 = vector.shape_cast %5 : vector<1x3x64xf32> to vector<3x64xf32>
    %cst = arith.constant dense<0.000000e+00> : vector<16x64xf32>
    %7 = tpu.matmul %4, %6, %cst {dimension_numbers = #tpu.dot_dimension_numbers<[1], [0], [0], [1], [0, 0, 1, 1], [], []>} : vector<16x3xf32>, vector<3x64xf32>, vector<16x64xf32> -> vector<16x64xf32>
    %c0_6 = arith.constant 0 : index
    %c0_7 = arith.constant 0 : index
    %8 = vector.load %arg5[%c0_6, %c0_7] : memref<1x64xf32, #tpu.memory_space<vmem>>, vector<1x64xf32>
    %9 = vector.broadcast %8 : vector<1x64xf32> to vector<16x64xf32>
    %10 = arith.addf %7, %9 : vector<16x64xf32>
    %cst_8 = arith.constant 0.000000e+00 : f32
    %11 = vector.broadcast %cst_8 : f32 to vector<16x64xf32>
    %12 = arith.maximumf %10, %11 : vector<16x64xf32>
    %13 = arith.truncf %12 : vector<16x64xf32> to vector<16x64xbf16>
    %c0_9 = arith.constant 0 : index
    %c0_10 = arith.constant 0 : index
    %14 = vector.load %arg6[%c0_9, %c0_10] : memref<64x128xbf16, #tpu.memory_space<vmem>>, vector<64x128xbf16>
    %cst_11 = arith.constant dense<0.000000e+00> : vector<16x128xf32>
    %15 = tpu.matmul %13, %14, %cst_11 {dimension_numbers = #tpu.dot_dimension_numbers<[1], [0], [0], [1], [0, 0, 1, 1], [], []>} : vector<16x64xbf16>, vector<64x128xbf16>, vector<16x128xf32> -> vector<16x128xf32>
    %c0_12 = arith.constant 0 : index
    %c0_13 = arith.constant 0 : index
    %16 = vector.load %arg7[%c0_12, %c0_13] : memref<1x128xf32, #tpu.memory_space<vmem>>, vector<1x128xf32>
    %17 = vector.broadcast %16 : vector<1x128xf32> to vector<16x128xf32>
    %18 = arith.addf %15, %17 : vector<16x128xf32>
    %cst_14 = arith.constant 0.000000e+00 : f32
    %19 = vector.broadcast %cst_14 : f32 to vector<16x128xf32>
    %20 = arith.maximumf %18, %19 : vector<16x128xf32>
    %21 = arith.truncf %20 : vector<16x128xf32> to vector<16x128xbf16>
    %c0_15 = arith.constant 0 : index
    %c0_16 = arith.constant 0 : index
    %22 = vector.load %arg8[%c0_15, %c0_16] : memref<128x1024xbf16, #tpu.memory_space<vmem>>, vector<128x1024xbf16>
    %cst_17 = arith.constant dense<0.000000e+00> : vector<16x1024xf32>
    %23 = tpu.matmul %21, %22, %cst_17 {dimension_numbers = #tpu.dot_dimension_numbers<[1], [0], [0], [1], [0, 0, 1, 1], [], []>} : vector<16x128xbf16>, vector<128x1024xbf16>, vector<16x1024xf32> -> vector<16x1024xf32>
    %c0_18 = arith.constant 0 : index
    %c0_19 = arith.constant 0 : index
    %24 = vector.load %arg9[%c0_18, %c0_19] : memref<1x1024xf32, #tpu.memory_space<vmem>>, vector<1x1024xf32>
    %25 = vector.broadcast %24 : vector<1x1024xf32> to vector<16x1024xf32>
    %26 = arith.addf %23, %25 : vector<16x1024xf32>
    %cst_20 = arith.constant 0.000000e+00 : f32
    %27 = vector.broadcast %cst_20 : f32 to vector<16x1024xf32>
    %28 = arith.maximumf %26, %27 : vector<16x1024xf32>
    %c0_21 = arith.constant 0 : index
    %c0_22 = arith.constant 0 : index
    %29 = vector.load %arg11[%c0_21, %c0_22] : memref<1x1024xf32, #tpu.memory_space<vmem>>, vector<1x1024xf32>
    %cst_23 = arith.constant dense<0xFF800000> : vector<1024xf32>
    %30 = vector.multi_reduction <maximumf>, %28, %cst_23 [0] : vector<16x1024xf32> to vector<1024xf32>
    %31 = vector.shape_cast %30 : vector<1024xf32> to vector<1x1024xf32>
    %32 = arith.maximumf %29, %31 : vector<1x1024xf32>
    %c0_24 = arith.constant 0 : index
    %c0_25 = arith.constant 0 : index
    %33 = vector.load %arg11[%c0_24, %c0_25] : memref<1x1024xf32, #tpu.memory_space<vmem>>, vector<1x1024xf32>
    tpu.vector_store %arg11[%c0_24, %c0_25], %32 {strides = array<i32>} : memref<1x1024xf32, #tpu.memory_space<vmem>>, vector<1x1024xf32>,
    %c0_i32_26 = arith.constant 0 : i32
    %34 = arith.cmpi eq, %arg2, %c0_i32_26 : i32
    %35 = arith.extui %34 : i1 to i32
    %c0_i32_27 = arith.constant 0 : i32
    %36 = arith.cmpi ne, %35, %c0_i32_27 : i32
    scf.if %36 {
      %c0_28 = arith.constant 0 : index
      %c0_29 = arith.constant 0 : index
      %37 = vector.load %arg11[%c0_28, %c0_29] : memref<1x1024xf32, #tpu.memory_space<vmem>>, vector<1x1024xf32>
      %c0_30 = arith.constant 0 : index
      %c0_31 = arith.constant 0 : index
      %c0_32 = arith.constant 0 : index
      %38 = vector.load %arg10[%c0_30, %c0_31, %c0_32] : memref<1x1x1024xf32, #tpu.memory_space<vmem>>, vector<1x1x1024xf32>
      %39 = vector.shape_cast %38 : vector<1x1x1024xf32> to vector<1x1024xf32>
      %40 = vector.shape_cast %37 : vector<1x1024xf32> to vector<1x1x1024xf32>
      tpu.vector_store %arg10[%c0_30, %c0_31, %c0_32], %40 {strides = array<i32>} : memref<1x1x1024xf32, #tpu.memory_space<vmem>>, vector<1x1x1024xf32>,
    } else {
    }
    return
  }
  func.func @transform_0(%arg0: i32, %arg1: i32, %arg2: i32) -> (i32, i32, i32) {
    %c1_i32 = arith.constant 1 : i32
    %0 = arith.muli %arg1, %c1_i32 : i32
    %1 = arith.addi %0, %arg2 : i32
    %c0_i32 = arith.constant 0 : i32
    %c0_i32_0 = arith.constant 0 : i32
    return %arg0, %1, %c0_i32 : i32, i32, i32
  }
  func.func @transform_1(%arg0: i32, %arg1: i32, %arg2: i32) -> (i32, i32, i32) {
    %c0_i32 = arith.constant 0 : i32
    %c0_i32_0 = arith.constant 0 : i32
    %c0_i32_1 = arith.constant 0 : i32
    %c0_i32_2 = arith.constant 0 : i32
    return %c0_i32, %c0_i32_0, %c0_i32_1 : i32, i32, i32
  }
  func.func @transform_2(%arg0: i32, %arg1: i32, %arg2: i32) -> (i32, i32) {
    %c0_i32 = arith.constant 0 : i32
    %c0_i32_0 = arith.constant 0 : i32
    %c0_i32_1 = arith.constant 0 : i32
    return %c0_i32, %c0_i32_0 : i32, i32
  }
  func.func @transform_3(%arg0: i32, %arg1: i32, %arg2: i32) -> (i32, i32) {
    %c0_i32 = arith.constant 0 : i32
    %c0_i32_0 = arith.constant 0 : i32
    %c0_i32_1 = arith.constant 0 : i32
    return %c0_i32, %c0_i32_0 : i32, i32
  }
  func.func @transform_4(%arg0: i32, %arg1: i32, %arg2: i32) -> (i32, i32) {
    %c0_i32 = arith.constant 0 : i32
    %c0_i32_0 = arith.constant 0 : i32
    %c0_i32_1 = arith.constant 0 : i32
    return %c0_i32, %c0_i32_0 : i32, i32
  }
  func.func @transform_5(%arg0: i32, %arg1: i32, %arg2: i32) -> (i32, i32) {
    %c0_i32 = arith.constant 0 : i32
    %c0_i32_0 = arith.constant 0 : i32
    %c0_i32_1 = arith.constant 0 : i32
    return %c0_i32, %c0_i32_0 : i32, i32
  }
  func.func @transform_6(%arg0: i32, %arg1: i32, %arg2: i32) -> (i32, i32) {
    %c0_i32 = arith.constant 0 : i32
    %c0_i32_0 = arith.constant 0 : i32
    %c0_i32_1 = arith.constant 0 : i32
    return %c0_i32, %c0_i32_0 : i32, i32
  }
  func.func @transform_7(%arg0: i32, %arg1: i32, %arg2: i32) -> (i32, i32, i32) {
    %c0_i32 = arith.constant 0 : i32
    %c0_i32_0 = arith.constant 0 : i32
    return %arg0, %arg1, %c0_i32 : i32, i32, i32
  }
}

</mosaic_0001>

<bundles_post_ra>
// kernel: tpu_custom_call.1
= control target key start
LH: loop header
LB: loop body
LE: loop exit
PB: predicated region body
PF: predicated region fallthrough
CT: control target
= control target key end

     0   :  { %12 = vsyncpa [#allocation4], 0  ;;  %s1881_s0 = inlined_call_operand.vmem [shape: f32[2,16,3], index: 0, kind: input, shape index: {}]   ;;  %s1882_s1 = inlined_call_operand.vmem [shape: f32[1,3,64], index: 1, kind: input, shape index: {}]   ;;  %s1883_s2 = inlined_call_operand.vmem [shape: f32[1,64], index: 2, kind: input, shape index: {}]   ;;  %s1884_s3 = inlined_call_operand.vmem [shape: bf16[64,128], index: 3, kind: input, shape index: {}]   ;;  %s1885_s4 = inlined_call_operand.vmem [shape: f32[1,128], index: 4, kind: input, shape index: {}]   ;;  %s1886_s5 = inlined_call_operand.hbm [shape: bf16[128,1024], index: 5, kind: input, shape index: {}]   ;;  %s1887_s6 = inlined_call_operand.vmem [shape: f32[1,1024], index: 6, kind: input, shape index: {}]   ;;  %s1888_s7 = inlined_call_operand.hbm [shape: f32[2,1,1024], index: 7, kind: output, shape index: {}]  }
   0x1   :  { %13 = vsyncpa [#allocation5], 0 }
   0x2   :  { %15 = vsyncpa [#allocation5 + $0x1], 0  ;;  %s1720_s24 = smov 0   ;;  %s1722_s25 = smov 0  }
   0x3   :  { %s1724_s26 = smov 0   ;;  %s1726_s27 = smov 0  }
   0x4   :  { %s1728_s28 = smov 0   ;;  %s1730_s29 = smov 0  }
   0x5 LB: > { %s1372_s30 = sadd.s32 4294967295, %s1670_s29   ;;  %s1373_s8 = sadd.s32 4294967294, %s1670_s29   ;;  %s1670_s29 = sphi %s1730_s29, %s21_s29   ;;  %s1666_s28 = sphi %s1728_s28, %s1897_s28   ;;  %s1662_s27 = sphi %s1726_s27, %s1896_s27   ;;  %s1658_s26 = sphi %s1724_s26, %s1895_s26   ;;  %s1654_s25 = sphi %s1722_s25, %s1894_s25   ;;  %s1650_s24 = sphi %s1720_s24, %s1893_s24  }
   0x6   : > { %s40_s9 = sadd.s32 1, %s1666_s28  ;;  %s205_s10 = sadd.s32 1, %s1658_s26 }
   0x7   : > { %p42_p0 = scmp.ge.s32.totalorder %s40_s9, 2  ;;  %p215_p1 = scmp.ne.s32.totalorder %s1658_s26, %s1654_s25 }
   0x8   : > { %p216_p2 = scmp.eq.s32.totalorder %s1372_s30, 1  ;;  %p221_p3 = scmp.ne.s32.totalorder %s1654_s25, %s1650_s24 }
   0x9   : > { %s1899_s9 = smov (%p42_p0, %s40_s9), 0  ;;  %p222_p5 = scmp.eq.s32.totalorder %s1373_s8, 1 }
   0xa   : > { %p1760_p4 = por %p216_p2, %p215_p1  ;;  %s200_s12 = ssub.s32 %s1666_s28, %s1899_s9 }
   0xb   : > { %p1374_p6 = scmp.ge.s32.totalorder %s1670_s29, 1  ;;  %p203_p7 = scmp.eq.s32.totalorder %s200_s12, 0 }
   0xc   : > { %p1767_p8 = por %p222_p5, %p221_p3  ;;  %p229_p9 = scmp.lt.s32.totalorder %s1670_s29, 3 }
   0xd   : > { %s1773_s14 = scalar_select %p203_p7, %s1658_s26, %s205_s10  }
   0xe   : > { %p1775_p10 = pnand %p1374_p6, %p229_p9  ;;  %p1779_p11 = scmp.eq.s32.totalorder %s1372_s30, 0 }
   0xf   : > { %s1672_s17 = smov [#allocation3]  }
  0x10   : > { %p1494_p12 = pneg %p1775_p10  ;;  %s253_s18 = sshll.u32 %s1672_s17, 4  ;;  %s254_s18 = int_to_ptr.vmem [resolvable:$true] %s253_s18 }
  0x11   : > { %s1575_s19 = scalar_lea.vmem %s254_s18, 8192  ;;  %p1583_p5 = scmp.lt.s32.totalorder %s254_s18, %s254_s18 }
  0x12   : > { %p1495_p13 = pnand %p1779_p11, %p1494_p12  ;;  %p1576_p1 = scmp.ne.s32.totalorder %s254_s18, %s1575_s19 }
  0x13   : > { %p1584_p6 = scmp.lt.s32.totalorder %s1575_s19, %s1575_s19 }
  0x14   : > { %p1566_p0 = pneg %p1495_p13 }
  0x15   : > { %p1585_p7 = por %p1584_p6, %p1583_p5 }
  0x16   : > { %p1578_p2 = pnand %p1576_p1, %p1566_p0 }
  0x18   : > { %p1579_p3 = pneg %p1578_p2 }
  0x1a   : > { %p1586_p9 = pnand %p1585_p7, %p1579_p3 }
  0x1c   : > { %1589 = shalt.err (!%p1586_p9)
}
  0x1d   : > { %s1673_s20 = smov 512   ;;  %s1674_s21 = smov 32  }
  0x1e   : > { %1497 = dma.hbm_to_vmem [thread:$0]  (!%p1495_p13), %s1886_s5, 8192, %s254_s18, [#allocation4], %s1673_s20, %s1673_s20, %s1674_s21  }
  0x1f   : > { %287 = sbr.rel (%p1775_p10) target bundleno = 721 (0x2d1), region = 48 }
  0x24   : > { %1641 = dma.done.wait (%p1779_p11), [#allocation4], 8192  }
  0x25   : > { %1643 = vsyncadd (%p1779_p11), [#allocation4], 4294959104  ;;  %p326_p12 = scmp.lt.s32.totalorder %s1662_s27, 1  ;;  %v1675_v0 = vmov 0.0   ;;  %vm359_vm0 = vcmask 1042432   ;;  %vm352_vm1 = vcmask 23552  }
  0x26   : > { %1476 = vmatprep.subr.bf16.mxu1 %v1675_v0  ;;  %v344_v1 = vld [vmem:[%s1882_s1] sm:$0x7]  ;;  %v1560_v4 = vld [vmem:[%s1884_s3 + $0x18] sm:$0xff]   ;;  %v1561_v5 = vld [vmem:[%s1884_s3 + $0x10] sm:$0xff]   ;;  %vm1676_vm2 = vmmov 0   ;;  %vm480_vm3 = vcmask 523264  }
  0x27   : > { %s327_s30 = scalar_select %p326_p12, %s1662_s27, 1  ;;  %1471 = vmatprep.subr.msk.mxu0 %vm359_vm0, %v344_v1  ;;  %1477 = vmatpush3.bf16.msra.mxu1 %v1560_v4  ;;  %v1562_v6 = vld [vmem:[%s1884_s3 + $0x8] sm:$0xff]   ;;  %v1563_v7 = vld [vmem:[%s1884_s3] sm:$0xff]  }
  0x28   : > { %1472 = vmatpush3.msk.msra.mxu0 %vm359_vm0, %v344_v1  ;;  %1478 = vmatprep.subr.bf16.mxu1 %v1675_v0  ;;  %v584_v8 = vld [vmem:[#allocation3 + $0x1c0] sm:$0xff]  ;;  %v585_v10 = vld [vmem:[#allocation3 + $0x1c8] sm:$0xff]  ;;  %s321_s19 = sand.u32 1, %s1654_s25   ;;  %s1462_s21 = sshll.u32 %s1662_s27, 7 }
  0x29   : > { %s1461_s8 = sshll.u32 %s327_s30, 4  ;;  %1484 = vmatprep.mubr.msk.bf16.mxu1 %vm1676_vm2, %v1675_v0  ;;  %v588_v9 = vld [vmem:[#allocation3 + $0x1e0] sm:$0xff]  ;;  %v589_v13 = vld [vmem:[#allocation3 + $0x1e8] sm:$0xff]  ;;  %s1379_s20 = sshll.u32 %s321_s19, 3 }
  0x2a   : > { %s333_s17 = scalar_lea.vmem %s1881_s0, %s1461_s8  ;;  %v1448_v11 = vcombine.low %v584_v8, %v588_v9  ;;  %v1449_v12 = vcombine.high %v584_v8, %v588_v9  ;;  %v576_v14 = vld [vmem:[#allocation3 + $0x180] sm:$0xff]  ;;  %v1450_v16 = vcombine.low %v585_v10, %v589_v13  ;;  %v1451_v17 = vcombine.high %v585_v10, %v589_v13  ;;  %v577_v41 = vld [vmem:[#allocation3 + $0x188] sm:$0xff]  ;;  %s323_s22 = scalar_lea.vmem [#allocation6], %s1379_s20 }
  0x2b   : > { %v342_v2 = vld [vmem:[%s333_s17] sm:$0xff]  ;;  %v343_v3 = vld [vmem:[%s333_s17 + $0x8] sm:$0xff]  ;;  %1479 = vmatpush3.bf16.msra.mxu1 %v1561_v5  ;;  %s1281_s23 = sshll.u32 %s323_s22, 4  ;;  %s1279_s10 = scalar_lea.hbm %s1888_s7, %s1462_s21  ;;  %s1282_s23 = int_to_ptr.vmem [resolvable:$true] %s1281_s23 }
  0x2c   : > { %1473 = vmatprep.mubr.msk.f32.mxu0 %vm352_vm1, %v342_v2  ;;  %1480 = vmatprep.subr.bf16.mxu1 %v1675_v0  ;;  %v580_v15 = vld [vmem:[#allocation3 + $0x1a0] sm:$0xff]  ;;  %v581_v42 = vld [vmem:[#allocation3 + $0x1a8] sm:$0xff]  ;;  %s1265_s12 = scalar_lea.sflag [#allocation5], %s321_s19  ;;  %s1590_s17 = scalar_lea.vmem %s1282_s23, 128 }
  0x2d   : > { %1474 = vmatmul.mubr.msk.f32.vlgmr.msra.gmra.mxu0 %vm352_vm1, %v343_v3  ;;  %v1441_v18 = vcombine.high %v576_v14, %v580_v15  ;;  %954 = vmatprep.subr.bf16.mxu0 %v1449_v12  ;;  %v1440_v19 = vcombine.low %v576_v14, %v580_v15  ;;  %v568_v20 = vld [vmem:[#allocation3 + $0x140] sm:$0xff]  ;;  %v1443_v46 = vcombine.high %v577_v41, %v581_v42  ;;  %v569_v47 = vld [vmem:[#allocation3 + $0x148] sm:$0xff]  ;;  %p1591_p10 = scmp.ne.s32.totalorder %s1282_s23, %s1590_s17  ;;  %s1679_s15 = smov [#allocation6]  }
  0x2e   : > { %955 = vmatpush1.bf16.msra.mxu0 %v1448_v11  ;;  %v572_v21 = vld [vmem:[#allocation3 + $0x160] sm:$0xff]  ;;  %v573_v48 = vld [vmem:[#allocation3 + $0x168] sm:$0xff]  ;;  %v1442_v49 = vcombine.low %v577_v41, %v581_v42  ;;  %v570_v41 = vld [vmem:[#allocation3 + $0x150] sm:$0xff]  ;;  %s1594_s18 = sshll.u32 %s1679_s15, 4  ;;  %s1595_s18 = int_to_ptr.vmem [resolvable:$false] %s1594_s18 }
  0x2f   : > { %1481 = vmatpush3.bf16.msra.mxu1 %v1562_v6  ;;  %956 = vmatprep.subr.bf16.mxu0 %v1441_v18  ;;  %v1433_v22 = vcombine.high %v568_v20, %v572_v21  ;;  %v1432_v23 = vcombine.low %v568_v20, %v572_v21  ;;  %v560_v24 = vld [vmem:[#allocation3 + $0x100] sm:$0xff]  ;;  %v1435_v50 = vcombine.high %v569_v47, %v573_v48  ;;  %v561_v51 = vld [vmem:[#allocation3 + $0x108] sm:$0xff]  ;;  %v587_v18 = vld [vmem:[#allocation3 + $0x1d8] sm:$0xff]  ;;  %p1592_p11 = pnand %p1591_p10, %p1760_p4  ;;  %s1596_s27 = scalar_lea.vmem %s1595_s18, 256 }
  0x30   : > { %1482 = vmatprep.subr.bf16.mxu1 %v1675_v0  ;;  %v564_v25 = vld [vmem:[#allocation3 + $0x120] sm:$0xff]  ;;  %v565_v52 = vld [vmem:[#allocation3 + $0x128] sm:$0xff]  ;;  %v1434_v53 = vcombine.low %v569_v47, %v573_v48  ;;  %v591_v20 = vld [vmem:[#allocation3 + $0x1f8] sm:$0xff]  ;;  %p1597_p0 = scmp.lt.s32.totalorder %s1282_s23, %s1595_s18  ;;  %p1598_p1 = scmp.lt.s32.totalorder %s1596_s27, %s1590_s17 }
  0x31   : > { %v1425_v26 = vcombine.high %v560_v24, %v564_v25  ;;  %v1424_v27 = vcombine.low %v560_v24, %v564_v25  ;;  %v552_v28 = vld [vmem:[#allocation3 + $0xc0] sm:$0xff]  ;;  %v1427_v54 = vcombine.high %v561_v51, %v565_v52  ;;  %v553_v55 = vld [vmem:[#allocation3 + $0xc8] sm:$0xff]  ;;  %v1426_v57 = vcombine.low %v561_v51, %v565_v52  ;;  %v574_v42 = vld [vmem:[#allocation3 + $0x170] sm:$0xff]  ;;  %p1593_p13 = pneg %p1592_p11 }
  0x32   : > { %957 = vmatpush1.bf16.msra.mxu0 %v1440_v19  ;;  %v556_v29 = vld [vmem:[#allocation3 + $0xe0] sm:$0xff]  ;;  %v557_v56 = vld [vmem:[#allocation3 + $0xe8] sm:$0xff]  ;;  %v1677_v24 = vmov 0   ;;  %v1437_v47 = vcombine.high %v570_v41, %v574_v42  ;;  %v563_v51 = vld [vmem:[#allocation3 + $0x118] sm:$0xff]  ;;  %p1599_p2 = por %p1598_p1, %p1597_p0 }
  0x33   : > { %1483 = vmatpush3.bf16.msra.mxu1 %v1563_v7  ;;  %958 = vmatprep.subr.bf16.mxu0 %v1433_v22  ;;  %v1417_v30 = vcombine.high %v552_v28, %v556_v29  ;;  %v1416_v31 = vcombine.low %v552_v28, %v556_v29  ;;  %v544_v32 = vld [vmem:[#allocation3 + $0x80] sm:$0xff]  ;;  %v1419_v58 = vcombine.high %v553_v55, %v557_v56  ;;  %v545_v59 = vld [vmem:[#allocation3 + $0x88] sm:$0xff]  ;;  %v567_v52 = vld [vmem:[#allocation3 + $0x138] sm:$0xff] }
  0x34   : > { %997 = vmatprep.subr.bf16.mxu1 %v1451_v17  ;;  %v548_v33 = vld [vmem:[#allocation3 + $0xa0] sm:$0xff]  ;;  %v549_v60 = vld [vmem:[#allocation3 + $0xa8] sm:$0xff]  ;;  %v1418_v61 = vcombine.low %v553_v55, %v557_v56  ;;  %v590_v17 = vld [vmem:[#allocation3 + $0x1f0] sm:$0xff]  ;;  %v1454_v22 = vcombine.low %v587_v18, %v591_v20  ;;  %986 = vmatprep.mubr.bf16.mxu0 %v1677_v24  ;;  %v1431_v56 = vcombine.high %v563_v51, %v567_v52  ;;  %p1600_p3 = pnand %p1599_p2, %p1593_p13 }
  0x35   : > { %v1409_v34 = vcombine.high %v544_v32, %v548_v33  ;;  %v1408_v35 = vcombine.low %v544_v32, %v548_v33  ;;  %v1382_v36 = vld [vmem:[%s1883_s2] ss:$0 sm:$0xff]  ;;  %v1411_v62 = vcombine.high %v545_v59, %v549_v60  ;;  %v1410_v63 = vcombine.low %v545_v59, %v549_v60  ;;  %v537_v2 = vld [vmem:[#allocation3 + $0x48] sm:$0xff]  ;;  %v582_v33 = vld [vmem:[#allocation3 + $0x1b0] sm:$0xff] }
  0x36   : > { %959 = vmatpush1.bf16.msra.mxu0 %v1432_v23  ;;  %v536_v0 = vld [vmem:[#allocation3 + $0x40] sm:$0xff]  ;;  %v541_v4 = vld [vmem:[#allocation3 + $0x68] sm:$0xff]  ;;  %v1455_v23 = vcombine.high %v587_v18, %v591_v20  ;;  %v555_v59 = vld [vmem:[#allocation3 + $0xd8] sm:$0xff] }
  0x37   : > { %960 = vmatprep.subr.bf16.mxu0 %v1425_v26  ;;  %v540_v1 = vld [vmem:[#allocation3 + $0x60] sm:$0xff]  ;;  %v1402_v6 = vcombine.low %v537_v2, %v541_v4  ;;  %v1403_v7 = vcombine.high %v537_v2, %v541_v4  ;;  %v529_v10 = vld [vmem:[#allocation3 + $0x8] sm:$0xff]  ;;  %v559_v60 = vld [vmem:[#allocation3 + $0xf8] sm:$0xff] }
  0x38   : > { %v1401_v3 = vcombine.high %v536_v0, %v540_v1  ;;  %v1400_v5 = vcombine.low %v536_v0, %v540_v1  ;;  %v528_v8 = vld [vmem:[#allocation3] sm:$0xff]  ;;  %v533_v12 = vld [vmem:[#allocation3 + $0x28] sm:$0xff]  ;;  %v1423_v0 = vcombine.high %v555_v59, %v559_v60  ;;  %v546_v1 = vld [vmem:[#allocation3 + $0x90] sm:$0xff] }
  0x39   : > { %v532_v9 = vld [vmem:[#allocation3 + $0x20] sm:$0xff]  ;;  %v1394_v14 = vcombine.low %v529_v10, %v533_v12  ;;  %v1395_v15 = vcombine.high %v529_v10, %v533_v12  ;;  %v550_v2 = vld [vmem:[#allocation3 + $0xb0] sm:$0xff]  ;;  %v551_v4 = vld [vmem:[#allocation3 + $0xb8] sm:$0xff] }
  0x3a   : > { %961 = vmatpush1.bf16.msra.mxu0 %v1424_v27  ;;  %v1393_v11 = vcombine.high %v528_v8, %v532_v9  ;;  %v1392_v13 = vcombine.low %v528_v8, %v532_v9  ;;  %v1386_v25 = vld [vmem:[%s1885_s4] ss:$0 sm:$0xff]  ;;  %v538_v9 = vld [vmem:[#allocation3 + $0x50] sm:$0xff]  ;;  %v543_v12 = vld [vmem:[#allocation3 + $0x78] sm:$0xff] }
  0x3b   : > { %962 = vmatprep.subr.bf16.mxu0 %v1417_v30  ;;  %v542_v10 = vld [vmem:[#allocation3 + $0x70] sm:$0xff]  ;;  %v535_v20 = vld [vmem:[#allocation3 + $0x38] sm:$0xff] }
  0x3c   : > { %v534_v18 = vld [vmem:[#allocation3 + $0x30] sm:$0xff] }
  0x3e   : > { %963 = vmatpush1.bf16.msra.mxu0 %v1416_v31  ;;  %v578_v31 = vld [vmem:[#allocation3 + $0x190] sm:$0xff] }
  0x3f   : > { %964 = vmatprep.subr.bf16.mxu0 %v1409_v34  ;;  %v579_v34 = vld [vmem:[#allocation3 + $0x198] sm:$0xff] }
  0x42   : > { %965 = vmatpush1.bf16.msra.mxu0 %v1408_v35  ;;  %v583_v35 = vld [vmem:[#allocation3 + $0x1b8] sm:$0xff] }
  0x43   : > { %966 = vmatprep.subr.bf16.mxu0 %v1401_v3  ;;  %v547_v3 = vld [vmem:[#allocation3 + $0x98] sm:$0xff] }
  0x44   : > { %v1415_v8 = vcombine.high %v547_v3, %v551_v4 }
  0x46   : > { %967 = vmatpush1.bf16.msra.mxu0 %v1400_v5 }
  0x47   : > { %968 = vmatprep.subr.bf16.mxu0 %v1393_v11  ;;  %v539_v11 = vld [vmem:[#allocation3 + $0x58] sm:$0xff] }
  0x4a   : > { %969 = vmatpush1.bf16.msra.mxu0 %v1392_v13  ;;  %v1412_v13 = vcombine.low %v546_v1, %v550_v2 }
  0xed   : > { %v1475_v37 = vpop.f32.mrf.mxu0 }
  0xee   : > { %v435_v38 = vadd.f32 %v1475_v37, %v1382_v36 }
  0xef   : > { %v429_v39 = vpop.f32.mrf.mxu0 }
  0xf0   : > { %v430_v40 = vadd.f32 %v1382_v36, %v429_v39  ;;  %v439_v43 = vmax.f32 %v435_v38, 0.0  ;;  %v1445_v39 = vcombine.high %v578_v31, %v582_v33 }
  0xf2   : > { %v438_v44 = vmax.f32 %v430_v40, 0.0  ;;  %v1447_v40 = vcombine.high %v579_v34, %v583_v35 }
  0xf4   : > { %v440_v45 = vpack.c.bf16 %v439_v43, %v438_v44  ;;  %v571_v43 = vld [vmem:[#allocation3 + $0x158] sm:$0xff] }
  0xf5   : > { %v575_v44 = vld [vmem:[#allocation3 + $0x178] sm:$0xff] }
  0xf6   : > { %1485 = vmatmul.mubr.msk.bf16.vlgmr.msra.gmra.mxu1 %vm480_vm3, %v440_v45  ;;  %v1444_v45 = vcombine.low %v578_v31, %v582_v33  ;;  %v1439_v48 = vcombine.high %v571_v43, %v575_v44 }
  0xf7   : > { %998 = vmatpush1.bf16.msra.mxu1 %v1450_v16  ;;  %v586_v16 = vld [vmem:[#allocation3 + $0x1d0] sm:$0xff]  ;;  %1029 = vmatprep.mubr.bf16.mxu1 %v1677_v24 }
  0xf8   : > { %999 = vmatprep.subr.bf16.mxu1 %v1443_v46  ;;  %v1453_v19 = vcombine.high %v586_v16, %v590_v17  ;;  %v1452_v21 = vcombine.low %v586_v16, %v590_v17  ;;  %v1446_v46 = vcombine.low %v579_v34, %v583_v35  ;;  %v1407_v16 = vcombine.high %v539_v11, %v543_v12  ;;  %v530_v17 = vld [vmem:[#allocation3 + $0x10] sm:$0xff] }
  0xfa   : > { %1040 = vmatprep.subr.bf16.mxu0 %v1453_v19  ;;  %v531_v19 = vld [vmem:[#allocation3 + $0x18] sm:$0xff] }
  0xfb   : > { %1000 = vmatpush1.bf16.msra.mxu1 %v1442_v49  ;;  %v562_v49 = vld [vmem:[#allocation3 + $0x110] sm:$0xff] }
  0xfc   : > { %1001 = vmatprep.subr.bf16.mxu1 %v1435_v50  ;;  %v566_v50 = vld [vmem:[#allocation3 + $0x130] sm:$0xff] }
  0xfd   : > { %v1429_v55 = vcombine.high %v562_v49, %v566_v50 }
  0xff   : > { %1002 = vmatpush1.bf16.msra.mxu1 %v1434_v53  ;;  %v1436_v53 = vcombine.low %v570_v41, %v574_v42 }
 0x100   : > { %1003 = vmatprep.subr.bf16.mxu1 %v1427_v54  ;;  %v1438_v54 = vcombine.low %v571_v43, %v575_v44 }
 0x103   : > { %1004 = vmatpush1.bf16.msra.mxu1 %v1426_v57  ;;  %v554_v57 = vld [vmem:[#allocation3 + $0xd0] sm:$0xff] }
 0x104   : > { %1005 = vmatprep.subr.bf16.mxu1 %v1419_v58  ;;  %v558_v58 = vld [vmem:[#allocation3 + $0xf0] sm:$0xff] }
 0x105   : > { %v1420_v5 = vcombine.low %v554_v57, %v558_v58 }
 0x107   : > { %1006 = vmatpush1.bf16.msra.mxu1 %v1418_v61  ;;  %v1428_v61 = vcombine.low %v562_v49, %v566_v50 }
 0x108   : > { %1007 = vmatprep.subr.bf16.mxu1 %v1411_v62  ;;  %v1430_v62 = vcombine.low %v563_v51, %v567_v52 }
 0x10b   : > { %1008 = vmatpush1.bf16.msra.mxu1 %v1410_v63  ;;  %v1421_v63 = vcombine.high %v554_v57, %v558_v58 }
 0x10c   : > { %1009 = vmatprep.subr.bf16.mxu1 %v1403_v7  ;;  %v1413_v7 = vcombine.high %v546_v1, %v550_v2 }
 0x10f   : > { %1010 = vmatpush1.bf16.msra.mxu1 %v1402_v6  ;;  %v1422_v6 = vcombine.low %v555_v59, %v559_v60 }
 0x110   : > { %1011 = vmatprep.subr.bf16.mxu1 %v1395_v15  ;;  %v1405_v15 = vcombine.high %v538_v9, %v542_v10 }
 0x113   : > { %1012 = vmatpush1.bf16.msra.mxu1 %v1394_v14  ;;  %v1414_v14 = vcombine.low %v547_v3, %v551_v4 }
 0x114   : > { %1083 = vmatprep.subr.bf16.mxu1 %v1455_v23  ;;  %v1397_v23 = vcombine.high %v530_v17, %v534_v18 }
 0x1b6   : > { %v518_v26 = vpop.f32.mrf.mxu1 }
 0x1b7   : > { %v519_v28 = vadd.f32 %v1386_v25, %v518_v26  ;;  %v1398_v26 = vcombine.low %v531_v19, %v535_v20 }
 0x1b8   : > { %v1486_v27 = vpop.f32.mrf.mxu1 }
 0x1b9   : > { %v525_v36 = vmax.f32 %v519_v28, 0.0 }
 0x1ba   : > { %v521_v29 = vpop.f32.mrf.mxu1 }
 0x1bb   : > { %v522_v30 = vadd.f32 %v1386_v25, %v521_v29  ;;  %v1396_v25 = vcombine.low %v530_v17, %v534_v18  ;;  %v594_v29 = vlaneseq }
 0x1bc   : > { %v1487_v32 = vpop.f32.mrf.mxu1 }
 0x1bd   : > { %v526_v37 = vmax.f32 %v522_v30, 0.0  ;;  %v1828_v32 = vshrl.u32 %v594_v29, 7 }
 0x1bf   : > { %v1822_v38 = vpack.c.bf16 %v526_v37, %v525_v36  ;;  %v600_v35 = vsub.s32 1, %v1828_v32  ;;  %v608_v36 = vsub.s32 3, %v1828_v32  ;;  %v596_v37 = vsub.s32 0, %v1828_v32 }
 0x1c0   : > { %v612_v4 = vsub.s32 4, %v1828_v32 }
 0x1c1   : > { %987 = vmatmul.mubr.bf16.vlgmr.msra.gmra.mxu0 %v1822_v38  ;;  %1030 = vmatmul.mubr.bf16.vlgmr.msra.gmra.mxu1 %v1822_v38 }
 0x1c2   : > { %1041 = vmatpush1.bf16.msra.mxu0 %v1452_v21  ;;  %1084 = vmatpush1.bf16.msra.mxu1 %v1454_v22  ;;  %v1404_v21 = vcombine.low %v538_v9, %v542_v10  ;;  %v1406_v22 = vcombine.low %v539_v11, %v543_v12  ;;  %v624_v9 = vsub.s32 7, %v1828_v32 }
 0x1c3   : > { %1042 = vmatprep.subr.bf16.mxu0 %v1445_v39  ;;  %1085 = vmatprep.subr.bf16.mxu1 %v1447_v40  ;;  %v604_v39 = vsub.s32 2, %v1828_v32 }
 0x1c4   : > { %1072 = vmatprep.mubr.bf16.mxu0 %v1677_v24  ;;  %1115 = vmatprep.mubr.bf16.mxu1 %v1677_v24  ;;  %v1399_v24 = vcombine.high %v531_v19, %v535_v20 }
 0x1c6   : > { %1043 = vmatpush1.bf16.msra.mxu0 %v1444_v45  ;;  %1086 = vmatpush1.bf16.msra.mxu1 %v1446_v46 }
 0x1c7   : > { %1044 = vmatprep.subr.bf16.mxu0 %v1437_v47  ;;  %1087 = vmatprep.subr.bf16.mxu1 %v1439_v48 }
 0x1ca   : > { %1045 = vmatpush1.bf16.msra.mxu0 %v1436_v53  ;;  %1088 = vmatpush1.bf16.msra.mxu1 %v1438_v54 }
 0x1cb   : > { %1046 = vmatprep.subr.bf16.mxu0 %v1429_v55  ;;  %1089 = vmatprep.subr.bf16.mxu1 %v1431_v56 }
 0x1ce   : > { %1047 = vmatpush1.bf16.msra.mxu0 %v1428_v61  ;;  %1090 = vmatpush1.bf16.msra.mxu1 %v1430_v62 }
 0x1cf   : > { %1048 = vmatprep.subr.bf16.mxu0 %v1421_v63  ;;  %1091 = vmatprep.subr.bf16.mxu1 %v1423_v0 }
 0x1d2   : > { %1049 = vmatpush1.bf16.msra.mxu0 %v1420_v5  ;;  %1092 = vmatpush1.bf16.msra.mxu1 %v1422_v6  ;;  %v620_v5 = vsub.s32 6, %v1828_v32 }
 0x1d3   : > { %1050 = vmatprep.subr.bf16.mxu0 %v1413_v7  ;;  %1093 = vmatprep.subr.bf16.mxu1 %v1415_v8  ;;  %v616_v8 = vsub.s32 5, %v1828_v32 }
 0x1d6   : > { %1051 = vmatpush1.bf16.msra.mxu0 %v1412_v13  ;;  %1094 = vmatpush1.bf16.msra.mxu1 %v1414_v14 }
 0x1d7   : > { %1052 = vmatprep.subr.bf16.mxu0 %v1405_v15  ;;  %1095 = vmatprep.subr.bf16.mxu1 %v1407_v16 }
 0x1da   : > { %1053 = vmatpush1.bf16.msra.mxu0 %v1404_v21  ;;  %1096 = vmatpush1.bf16.msra.mxu1 %v1406_v22 }
 0x1db   : > { %1054 = vmatprep.subr.bf16.mxu0 %v1397_v23  ;;  %1097 = vmatprep.subr.bf16.mxu1 %v1399_v24 }
 0x1de   : > { %1055 = vmatpush1.bf16.msra.mxu0 %v1396_v25  ;;  %1098 = vmatpush1.bf16.msra.mxu1 %v1398_v26 }
 0x1e1   : > { %1073 = vmatmul.mubr.bf16.vlgmr.msra.gmra.mxu0 %v1822_v38  ;;  %1116 = vmatmul.mubr.bf16.vlgmr.msra.gmra.mxu1 %v1822_v38  ;;  %v592_v38 = vld [vmem:[%s1887_s6] sm:$0xff] }
 0x1e2   : > { %v601_v42 = vrot.slane %v592_v38, %v600_v35  ;;  %v609_v43 = vrot.slane %v592_v38, %v608_v36  ;;  %v597_v44 = vrot.slane %v592_v38, %v596_v37  ;;  %v605_v45 = vrot.slane %v592_v38, %v604_v39 }
 0x1e3   : > { %v613_v12 = vrot.slane %v592_v38, %v612_v4  ;;  %v621_v13 = vrot.slane %v592_v38, %v620_v5  ;;  %v617_v18 = vrot.slane %v592_v38, %v616_v8  ;;  %v625_v19 = vrot.slane %v592_v38, %v624_v9 }
 0x281   : > { %v988_v27 = vpop.f32.mrf.mxu0  ;;  %v1031_v28 = vpop.f32.mrf.mxu1 }
 0x282   : > { %v989_v52 = vadd.f32 %v988_v27, %v597_v44  ;;  %v1032_v53 = vadd.f32 %v1031_v28, %v605_v45 }
 0x283   : > { %v990_v30 = vpop.f32.mrf.mxu0  ;;  %v1033_v31 = vpop.f32.mrf.mxu1 }
 0x284   : > { %v991_v48 = vadd.f32 %v990_v30, %v601_v42  ;;  %v1034_v49 = vadd.f32 %v1033_v31, %v609_v43  ;;  %v1126_v60 = vmax.f32 %v989_v52, 0.0  ;;  %v1128_v61 = vmax.f32 %v1032_v53, 0.0 }
 0x285   : > { %v992_v33 = vpop.f32.mrf.mxu0  ;;  %v1035_v34 = vpop.f32.mrf.mxu1 }
 0x286   : > { %v993_v50 = vadd.f32 %v992_v33, %v597_v44  ;;  %v1036_v51 = vadd.f32 %v1035_v34, %v605_v45  ;;  %v1127_v56 = vmax.f32 %v991_v48, 0.0  ;;  %v1129_v57 = vmax.f32 %v1034_v49, 0.0 }
 0x287   : > { %v994_v40 = vpop.f32.mrf.mxu0  ;;  %v1037_v41 = vpop.f32.mrf.mxu1 }
 0x288   : > { %v995_v46 = vadd.f32 %v994_v40, %v601_v42  ;;  %v1038_v47 = vadd.f32 %v1037_v41, %v609_v43  ;;  %v1134_v58 = vmax.f32 %v993_v50, 0.0  ;;  %v1136_v59 = vmax.f32 %v1036_v51, 0.0 }
 0x28a   : > { %v1135_v54 = vmax.f32 %v995_v46, 0.0  ;;  %v1137_v55 = vmax.f32 %v1038_v47, 0.0  ;;  %v1143_v0 = vmax.f32 %v1126_v60, %v1134_v58  ;;  %v1157_v1 = vmax.f32 %v1128_v61, %v1136_v59 }
 0x28c   : > { %v1150_v62 = vmax.f32 %v1127_v56, %v1135_v54  ;;  %v1164_v63 = vmax.f32 %v1129_v57, %v1137_v55  ;;  %v1144_v6 = vrot.slane %v1143_v0, 4  ;;  %v1158_v7 = vrot.slane %v1157_v1, 4 }
 0x28d   : > { %v1678_v54 = vmov 1966171168  }
 0x28e   : > { %v1151_v2 = vrot.slane %v1150_v62, 4  ;;  %v1165_v3 = vrot.slane %v1164_v63, 4  ;;  %v1145_v14 = vmax.f32 %v1143_v0, %v1144_v6  ;;  %v1159_v15 = vmax.f32 %v1157_v1, %v1158_v7 }
 0x28f   : > { %v1212_v55 = vunpack.c.l.s4 %v1678_v54 }
 0x290   : > { %v1152_v10 = vmax.f32 %v1150_v62, %v1151_v2  ;;  %v1166_v11 = vmax.f32 %v1164_v63, %v1165_v3  ;;  %v1146_v26 = vrot.slane %v1145_v14, 2  ;;  %v1160_v27 = vrot.slane %v1159_v15, 2 }
 0x291   : > { %v1213_v4 = vunpack.c.0.s8 %v1212_v55 }
 0x292   : > { %v1153_v20 = vrot.slane %v1152_v10, 2  ;;  %v1167_v21 = vrot.slane %v1166_v11, 2  ;;  %v1147_v45 = vmax.f32 %v1145_v14, %v1146_v26  ;;  %v1161_v46 = vmax.f32 %v1159_v15, %v1160_v27 }
 0x294   : > { %v1154_v35 = vmax.f32 %v1152_v10, %v1153_v20  ;;  %v1168_v36 = vmax.f32 %v1166_v11, %v1167_v21  ;;  %v1148_v61 = vrot.slane %v1147_v45, 1  ;;  %v1162_v62 = vrot.slane %v1161_v46, 1 }
 0x296   : > { %v1155_v53 = vrot.slane %v1154_v35, 1  ;;  %v1169_v56 = vrot.slane %v1168_v36, 1  ;;  %v1149_v10 = vmax.f32 %v1147_v45, %v1148_v61  ;;  %v1163_v11 = vmax.f32 %v1161_v46, %v1162_v62 }
 0x298   : > { %v1156_v3 = vmax.f32 %v1154_v35, %v1155_v53  ;;  %v1170_v5 = vmax.f32 %v1168_v36, %v1169_v56 }
 0x2a1   : > { %v1074_v16 = vpop.f32.mrf.mxu0  ;;  %v1117_v17 = vpop.f32.mrf.mxu1 }
 0x2a2   : > { %v1075_v22 = vadd.f32 %v1074_v16, %v613_v12  ;;  %v1118_v23 = vadd.f32 %v1117_v17, %v621_v13  ;;  %v1207_v16 = vcombine.low %v1149_v10, %v1156_v3  ;;  %v1216_v17 = vsub.s32 %v1213_v4, %v1828_v32 }
 0x2a3   : > { %v1076_v24 = vpop.f32.mrf.mxu0  ;;  %v1119_v25 = vpop.f32.mrf.mxu1 }
 0x2a4   : > { %v1077_v28 = vadd.f32 %v1076_v24, %v617_v18  ;;  %v1120_v29 = vadd.f32 %v1119_v25, %v625_v19  ;;  %v1130_v37 = vmax.f32 %v1075_v22, 0.0  ;;  %v1132_v39 = vmax.f32 %v1118_v23, 0.0 }
 0x2a5   : > { %v1078_v30 = vpop.f32.mrf.mxu0  ;;  %v1121_v31 = vpop.f32.mrf.mxu1  ;;  %v1217_v25 = vrot.slane %v1207_v16, %v1216_v17 }
 0x2a6   : > { %v1079_v33 = vadd.f32 %v1078_v30, %v613_v12  ;;  %v1122_v34 = vadd.f32 %v1121_v31, %v621_v13  ;;  %v1131_v47 = vmax.f32 %v1077_v28, 0.0  ;;  %v1133_v48 = vmax.f32 %v1120_v29, 0.0 }
 0x2a7   : > { %v1080_v40 = vpop.f32.mrf.mxu0  ;;  %v1123_v38 = vpop.f32.mrf.mxu1 }
 0x2a8   : > { %v1138_v41 = vmax.f32 %v1079_v33, 0.0  ;;  %v1140_v42 = vmax.f32 %v1122_v34, 0.0  ;;  %v1081_v43 = vadd.f32 %v1080_v40, %v617_v18  ;;  %v1124_v44 = vadd.f32 %v1123_v38, %v625_v19 }
 0x2a9   : > { %v1208_v18 = vcombine.low %v1163_v11, %v1170_v5 }
 0x2aa   : > { %v1171_v49 = vmax.f32 %v1130_v37, %v1138_v41  ;;  %v1185_v50 = vmax.f32 %v1132_v39, %v1140_v42  ;;  %v1139_v51 = vmax.f32 %v1081_v43, 0.0  ;;  %v1141_v52 = vmax.f32 %v1124_v44, 0.0 }
 0x2ab   : > { %v1224_v26 = vrot.slane %v1208_v18, %v1216_v17 }
 0x2ac   : > { %v1172_v57 = vrot.slane %v1171_v49, 4  ;;  %v1186_v58 = vrot.slane %v1185_v50, 4  ;;  %v1178_v59 = vmax.f32 %v1131_v47, %v1139_v51  ;;  %v1192_v60 = vmax.f32 %v1133_v48, %v1141_v52 }
 0x2ad   : > { %v1239_v35 = vcombine.low %v1217_v25, %v1224_v26 }
 0x2ae   : > { %v1173_v63 = vmax.f32 %v1171_v49, %v1172_v57  ;;  %v1187_v0 = vmax.f32 %v1185_v50, %v1186_v58  ;;  %v1179_v1 = vrot.slane %v1178_v59, 4  ;;  %v1193_v2 = vrot.slane %v1192_v60, 4 }
 0x2af   : > { %v1247_v37 = vrot.slane %v1239_v35, %v1216_v17 }
 0x2b0   : > { %v1174_v6 = vrot.slane %v1173_v63, 2  ;;  %v1188_v7 = vrot.slane %v1187_v0, 2  ;;  %v1180_v8 = vmax.f32 %v1178_v59, %v1179_v1  ;;  %v1194_v9 = vmax.f32 %v1192_v60, %v1193_v2 }
 0x2b2   : > { %v1175_v12 = vmax.f32 %v1173_v63, %v1174_v6  ;;  %v1189_v13 = vmax.f32 %v1187_v0, %v1188_v7  ;;  %v1181_v14 = vrot.slane %v1180_v8, 2  ;;  %v1195_v15 = vrot.slane %v1194_v9, 2 }
 0x2b4   : > { %v1176_v19 = vrot.slane %v1175_v12, 1  ;;  %v1190_v20 = vrot.slane %v1189_v13, 1  ;;  %v1182_v21 = vmax.f32 %v1180_v8, %v1181_v14  ;;  %v1196_v22 = vmax.f32 %v1194_v9, %v1195_v15 }
 0x2b6   : > { %v1183_v23 = vrot.slane %v1182_v21, 1  ;;  %v1197_v24 = vrot.slane %v1196_v22, 1  ;;  %v1177_v27 = vmax.f32 %v1175_v12, %v1176_v19  ;;  %v1191_v28 = vmax.f32 %v1189_v13, %v1190_v20 }
 0x2b8   : > { %v1184_v29 = vmax.f32 %v1182_v21, %v1183_v23  ;;  %v1198_v30 = vmax.f32 %v1196_v22, %v1197_v24 }
 0x2ba   : > { %v1209_v31 = vcombine.low %v1177_v27, %v1184_v29  ;;  %v1210_v33 = vcombine.low %v1191_v28, %v1198_v30 }
 0x2bc   : > { %v1231_v34 = vrot.slane %v1209_v31, %v1216_v17  ;;  %v1238_v32 = vrot.slane %v1210_v33, %v1216_v17 }
 0x2be   : > { %v1240_v36 = vcombine.low %v1231_v34, %v1238_v32 }
 0x2c0   : > { %v1254_v39 = vrot.slane %v1240_v36, %v1216_v17 }
 0x2c2   : > { %v1255_v40 = vcombine.low %v1247_v37, %v1254_v39 }
 0x2c4   : > { %1263 = vst [vmem:[%s323_s22] sm:$0xff] %v1255_v40 }
 0x2c5   : > { %1603 = shalt.err (!%p1600_p3)
}
 0x2c6   : > { %s1604_s16 = scalar_lea.hbm %s1279_s10, 128  ;;  %s1608_s21 = scalar_lea.hbm %s1888_s7, 256 }
 0x2c7   : > { %p1605_p5 = scmp.ne.s32.totalorder %s1279_s10, %s1604_s16  ;;  %p1609_p9 = scmp.lt.s32.totalorder %s1279_s10, %s1888_s7 }
 0x2c8   : > { %p1610_p12 = scmp.lt.s32.totalorder %s1608_s21, %s1604_s16 }
 0x2c9   : > { %p1606_p6 = pnand %p1605_p5, %p1760_p4 }
 0x2ca   : > { %p1611_p10 = por %p1610_p12, %p1609_p9 }
 0x2cb   : > { %p1607_p7 = pneg %p1606_p6 }
 0x2cd   : > { %p1612_p11 = pnand %p1611_p10, %p1607_p7 }
 0x2cf   : > { %1615 = shalt.err (!%p1612_p11)
}
 0x2d0   : > { %1492 = dma.vmem_to_hbm [thread:$0]  (%p1760_p4), %s1282_s23, 128, %s1279_s10, %s1265_s12  }
 0x2d1 PF: > { %p1504_p13 = scmp.ge.s32.totalorder %s1670_s29, 2  ;;  %s1293_s8 = sand.u32 1, %s1650_s24  }
 0x2d2   : > { %s1294_s17 = scalar_lea.sflag [#allocation5], %s1293_s8 }
 0x2d3   : > { %p1499_p0 = pnand %p1504_p13, %p1767_p8 }
 0x2d5   : > { %p1500_p1 = pneg %p1499_p0 }
 0x2d7   : > { %1645 = dma.done.wait (%p1500_p1), %s1294_s17, 128  }
 0x2d8   : > { %1647 = vsyncadd (%p1500_p1), %s1294_s17, 4294967168  ;;  %s21_s29 = sadd.s32 1, %s1670_s29   ;;  %s1893_s24 = smov %s1654_s25 }
 0x2d9   : > { %p18_p2 = scmp.ge.s32.totalorder %s21_s29, 4   ;;  %s1894_s25 = smov %s1658_s26 }
 0x2da   : > { %s1895_s26 = smov %s1773_s14  ;;  %s1896_s27 = smov %s1666_s28 }
 0x2db   : > { %s1897_s28 = smov %s1899_s9  ;;  %20 = sbr.rel (!%p18_p2) target bundleno = 5 (0x5), region = 96 }
 0x2e0   :  { %1299 = vsyncpa [#allocation4], 1 }
 0x2e1   :  { %1301 = vsyncpa [#allocation4 + $0x1], 1 }
 0x2e2   :  { %1302 = vsyncpa [#allocation5], 1 }
 0x2e3   :  { %1304 = vsyncpa [#allocation5 + $0x1], 1 }

</bundles_post_ra>
